<compile_context>
chip_gen: v6e
topology: v6e:2x2x1
jax: 0.10.0
libtpu: 0.0.40
codegen_flags: <defaults>
</compile_context>

<pallas_src>
import math

import jax
import jax.numpy as jnp
from jax.experimental import pallas as pl
from jax.experimental.pallas import tpu as pltpu

LANE = 128
SUBLANE = 8


def _round_up(x, m):
    return ((x + m - 1) // m) * m


def _cdiv(a, b):
    return (a + b - 1) // b


def init_params(key, num_dense, sparse_vocab_sizes, embedding_dim, hidden_units):
    """Deterministic parameter init (shapes follow the PyTorch module)."""
    D = len(sparse_vocab_sizes) * embedding_dim + num_dense
    keys = iter(jax.random.split(key, 64))

    def lin_init(k, fan_in, fan_out):
        bound = 1.0 / math.sqrt(fan_in)
        kw, kb = jax.random.split(k)
        w = jax.random.uniform(kw, (fan_in, fan_out), jnp.float32, -bound, bound)
        b = jax.random.uniform(kb, (1, fan_out), jnp.float32, -bound, bound)
        return w, b

    params = {}
    # Embedding tables (PyTorch default: N(0, 1)).
    params["emb"] = [jax.random.normal(next(keys), (v, embedding_dim), jnp.float32)
                     for v in sparse_vocab_sizes]

    # Cross(2, D): per layer Linear(D, 1) (weight [D,1], bias [1,1]) and a zero
    # bias parameter stored as [1, D].
    cross = []
    for _ in range(2):
        w, b = lin_init(next(keys), D, 1)
        bias = jnp.zeros((1, D), jnp.float32)
        cross.append((w, b, bias))
    params["cross"] = cross

    # DNN: [D, H1], [H1, H2].
    dims = [D] + list(hidden_units)
    params["dnn"] = [lin_init(next(keys), fi, fo)
                     for fi, fo in zip(dims[:-1], dims[1:])]

    # Final Linear(D + H_last, 1), split into cross / deep parts.
    wf, bf = lin_init(next(keys), D + hidden_units[-1], 1)
    params["final"] = (wf[:D, :], wf[D:, :], bf)   # [D,1], [H_last,1], [1,1]
    return params, D


def deepcross_forward(params, x, num_dense, *, tile_b=8192):
    """x: [B, num_dense + num_sparse] float32 (sparse columns hold integer ids)."""
    dense_inputs = x[:, :num_dense].astype(jnp.float32)
    sparse_inputs = x[:, num_dense:].astype(jnp.int32)
    n_sparse = sparse_inputs.shape[1]

    # Embedding lookups (data-dependent gathers) stay in plain JAX glue.  The
    # feature matrix is built already transposed ([D, B], batch on lanes) so
    # the kernel streams it with only 61->64 sublane padding (no lane padding),
    # and the pad/cast fuses into the producer instead of a zeros+scatter pass.
    cols = [dense_inputs.T] + [params["emb"][i][sparse_inputs[:, i]].T
                               for i in range(n_sparse)]
    feats_t = jnp.concatenate(cols, axis=0)                  # [D, B] f32
    D, B = feats_t.shape

    (cw0, clb0, cbias0), (cw1, clb1, cbias1) = params["cross"]
    (w1, b1), (w2, b2) = params["dnn"]
    wf_c, wf_d, bf = params["final"]
    H1, H2 = w1.shape[1], w2.shape[1]

    D_sub = _round_up(D, SUBLANE)        # feature axis on sublanes: 61 -> 64
    H1A = _round_up(H1 + 3, SUBLANE)     # DNN hidden + 3 folded dot-product rows

    # ---- Tile selection: big tiles (>= ~1 MiB) to amortize per-step overhead,
    # but keep >= 4 grid steps when the batch allows so v7x can shard the
    # "parallel" axis across both TensorCores.
    tile_b = max(LANE, _round_up(tile_b, LANE))
    TILE_B = min(tile_b, _round_up(B, LANE))
    while TILE_B > 2 * LANE and _cdiv(B, TILE_B) < 4:
        TILE_B = _round_up(TILE_B // 2, LANE)
    num_tiles = _cdiv(B, TILE_B)
    B_pad = num_tiles * TILE_B

    # Streamed operand: [D_sub, B_pad] bf16, zero padded.  Padded feature rows
    # multiply zero weight rows; padded batch columns are sliced off at the end.
    x_t = jnp.pad(feats_t.astype(jnp.bfloat16),
                  ((0, D_sub - D), (0, B_pad - B)))

    # ---- Cross network, algebraically folded (see header) -------------------
    beta0 = cbias0 + clb0[0, 0]                       # [1, D]
    beta1 = cbias1 + clb1[0, 0]
    # The folded dot weights ride the bf16 MXU matmul; compute the constants
    # with identically-quantized weights so precision matches the kernel.
    cw1_q = cw1.astype(jnp.bfloat16).astype(jnp.float32)
    wfc_q = wf_c.astype(jnp.bfloat16).astype(jnp.float32)
    c1 = jnp.sum(cw1_q[:, 0] * beta0[0])                          # w1c . beta0
    c2 = jnp.sum(wfc_q[:, 0] * (beta0 + beta1)[0]) + bf[0, 0]     # + final bias
    consts = jnp.stack([c1, c2]).astype(jnp.float32)              # SMEM scalars

    # ---- Resident weights ----------------------------------------------------
    # First matmul weights, transposed and augmented:
    #   rows 0..H1-1 : w1^T (DNN layer 1)
    #   row  H1      : w0    (cross layer-0 Linear weight)
    #   row  H1+1    : w1c   (cross layer-1 Linear weight)
    #   row  H1+2    : wf_c  (final Linear, cross part)
    #   rows beyond  : zeros (sublane padding)
    w1a_rows = jnp.concatenate([w1.T, cw0.T, cw1.T, wf_c.T], axis=0)   # [H1+3, D]
    w1a_t = jnp.pad(w1a_rows,
                    ((0, H1A - (H1 + 3)), (0, D_sub - D))).astype(jnp.bfloat16)
    b1a = jnp.pad(b1.T, ((0, H1A - H1), (0, 0))).astype(jnp.float32)   # [H1A, 1]
    w2_t = w2.T.astype(jnp.bfloat16)                                   # [H2, H1]
    b2_t = b2.T.astype(jnp.float32)                                    # [H2, 1]
    wfd_row = wf_d.T.astype(jnp.float32)                               # [1, H2]

    def kernel(xt_ref, w1a_ref, b1a_ref, w2t_ref, b2t_ref, wfd_ref,
               consts_ref, out_ref):
        xt = xt_ref[...]                                    # [D_sub, TILE_B] bf16
        # Fused first matmul: DNN layer-1 pre-activation plus the three folded
        # cross/final dot products as extra output rows (bf16 x bf16 -> f32).
        pre = jnp.dot(w1a_ref[...], xt,
                      preferred_element_type=jnp.float32) + b1a_ref[...]
        a0 = pre[H1 + 0:H1 + 1, :]                          # w0  . x0
        a1 = pre[H1 + 1:H1 + 2, :]                          # w1c . x0
        a2 = pre[H1 + 2:H1 + 3, :]                          # wfc . x0

        # DNN tower.
        # TODO(synk): Dropout is stochastic at train time; identity (eval mode).
        h1 = jnp.maximum(pre[:H1, :], 0.0).astype(jnp.bfloat16)
        h2 = jnp.maximum(
            jnp.dot(w2t_ref[...], h1, preferred_element_type=jnp.float32)
            + b2t_ref[...], 0.0)                            # [H2, TILE_B] f32
        deep = jnp.dot(wfd_ref[...], h2,
                       preferred_element_type=jnp.float32)  # [1, TILE_B]

        # Folded cross network + final Linear + sigmoid ([1, TILE_B] ops only).
        s0 = a0
        s1 = (s0 + 1.0) * a1 + consts_ref[0]
        logit = (s0 + s1 + 1.0) * a2 + deep + consts_ref[1]
        out_ref[...] = jax.nn.sigmoid(logit)                # lane-dense store

    def resident(shape):
        return pl.BlockSpec(shape, lambda i: (0, 0))

    flops = 2 * B_pad * (H1A * D_sub + H2 * H1 + H2) + 12 * B_pad
    bytes_accessed = (B_pad * D_sub * 2 + B_pad * 4 + H1A * D_sub * 2
                      + H2 * H1 * 2 + (H1A + 2 * H2) * 4 + 8)

    out = pl.pallas_call(
        kernel,
        out_shape=jax.ShapeDtypeStruct((1, B_pad), jnp.float32),
        grid=(num_tiles,),
        in_specs=[
            # Streamed batch tile (auto double-buffered by BlockSpec).
            pl.BlockSpec((D_sub, TILE_B), lambda i: (0, i)),
            resident((H1A, D_sub)),       # augmented first-layer weights (bf16)
            resident((H1A, 1)),           # augmented first-layer bias
            resident((H2, H1)),           # w2^T (bf16)
            resident((H2, 1)),            # b2
            resident((1, H2)),            # wf_d^T
            pl.BlockSpec(memory_space=pltpu.MemorySpace.SMEM),  # [c1, c2 + bf]
        ],
        out_specs=pl.BlockSpec((1, TILE_B), lambda i: (0, i)),  # lane-dense out
        compiler_params=pltpu.CompilerParams(
            dimension_semantics=("parallel",)),
        cost_estimate=pl.CostEstimate(
            flops=flops, transcendentals=B_pad, bytes_accessed=bytes_accessed),
    )(x_t, w1a_t, b1a, w2_t, b2_t, wfd_row, consts)

    return out[0, :B]


def deepcross_reference(params, x, num_dense, quantize_bf16=False):
    """Pure-JAX layer-by-layer reference matching the PyTorch module.

    quantize_bf16=True mirrors the kernel's precision choices (bf16 feature
    stream, bf16 w1/w2, bf16 folded cross/final dot weights, bf16 h1).
    """
    q = ((lambda a: a.astype(jnp.bfloat16).astype(jnp.float32))
         if quantize_bf16 else (lambda a: a))
    dense = x[:, :num_dense].astype(jnp.float32)
    sparse = x[:, num_dense:].astype(jnp.int32)
    emb = [params["emb"][i][sparse[:, i]] for i in range(sparse.shape[1])]
    f = q(jnp.concatenate([dense] + emb, axis=-1))
    (cw0, clb0, cb0), (cw1, clb1, cb1) = params["cross"]
    (w1, b1), (w2, b2) = params["dnn"]
    wf_c, wf_d, bf = params["final"]

    # Cross (2 layers, literal formulation of the PyTorch module).
    x0 = f
    xl = f
    for cw, clb, cb in ((q(cw0), clb0, cb0), (q(cw1), clb1, cb1)):
        s = xl @ cw                               # [B, 1]
        xl = x0 * s + clb[0, 0] + cb + xl         # Linear bias NOT scaled by x0

    # DNN tower (dropout = identity at eval).
    h = jnp.maximum(f @ q(w1) + b1, 0.0)
    h = q(h)
    h = jnp.maximum(h @ q(w2) + b2, 0.0)

    logits = xl @ q(wf_c) + h @ wf_d + bf[0, 0]
    return jax.nn.sigmoid(logits)[:, 0]


if __name__ == "__main__":
    key = jax.random.PRNGKey(0)
    k_param, k_dense, k_sparse = jax.random.split(key, 3)

    # Small, module-consistent shapes; batch/tile chosen to exercise a 2-step grid.
    B = 512
    num_dense = 13                                  # forward hardcodes x[:, :13]
    sparse_vocab_sizes = [10, 20, 15, 12, 30, 25]   # 6 sparse features
    embedding_dim = 8
    hidden_units = [32, 16]

    params, D = init_params(k_param, num_dense, sparse_vocab_sizes,
                            embedding_dim, hidden_units)

    dense_part = jax.random.normal(k_dense, (B, num_dense), jnp.float32)
    sparse_cols = [
        jax.random.randint(jax.random.fold_in(k_sparse, i), (B, 1), 0, v)
        .astype(jnp.float32)
        for i, v in enumerate(sparse_vocab_sizes)]
    x = jnp.concatenate([dense_part] + sparse_cols, axis=-1)   # [B, 13 + 6]

    y = deepcross_forward(params, x, num_dense, tile_b=256)
    jax.block_until_ready(y)
    assert y.shape == (B,)

    # Strict check against a reference that mirrors the kernel's quantization.
    y_ref_q = deepcross_reference(params, x, num_dense, quantize_bf16=True)
    err_q = float(jnp.max(jnp.abs(y - y_ref_q)))
    assert err_q < 2e-3, f"max abs error vs bf16-mirrored reference: {err_q}"

    # Loose sanity check against the full-f32 reference.
    y_ref_f = deepcross_reference(params, x, num_dense, quantize_bf16=False)
    err_f = float(jnp.max(jnp.abs(y - y_ref_f)))
    assert err_f < 5e-2, f"max abs error vs f32 reference: {err_f}"

    print("KERNEL_OK")
</pallas_src>

<mosaic_0001>
module attributes {stable_mosaic.version = 11 : i64} {
  func.func @kernel(%arg0: i32, %arg1: memref<64x256xbf16, #tpu.memory_space<vmem>>, %arg2: memref<40x64xbf16, #tpu.memory_space<vmem>>, %arg3: memref<40x1xf32, #tpu.memory_space<vmem>>, %arg4: memref<16x32xbf16, #tpu.memory_space<vmem>>, %arg5: memref<16x1xf32, #tpu.memory_space<vmem>>, %arg6: memref<1x16xf32, #tpu.memory_space<vmem>>, %arg7: memref<2xf32, #tpu.memory_space<smem>>, %arg8: memref<1x256xf32, #tpu.memory_space<vmem>>) attributes {dimension_semantics = [#tpu.dimension_semantics<parallel>], iteration_bounds = array<i64: 2>, scalar_prefetch = 0 : i64, scratch_operands = 0 : i64, tpu.core_type = #tpu.core_type<tc>, window_params = [{transform_indices = @transform_0, window_bounds = array<i64: 64, 256>}, {pipeline_mode = #tpu.pipeline_mode<synchronous>, transform_indices = @transform_1, window_bounds = array<i64: 40, 64>}, {pipeline_mode = #tpu.pipeline_mode<synchronous>, transform_indices = @transform_2, window_bounds = array<i64: 40, 1>}, {pipeline_mode = #tpu.pipeline_mode<synchronous>, transform_indices = @transform_3, window_bounds = array<i64: 16, 32>}, {pipeline_mode = #tpu.pipeline_mode<synchronous>, transform_indices = @transform_4, window_bounds = array<i64: 16, 1>}, {pipeline_mode = #tpu.pipeline_mode<synchronous>, transform_indices = @transform_5, window_bounds = array<i64: 1, 16>}, {transform_indices = @transform_6, window_bounds = array<i64: 2>}, {transform_indices = @transform_7, window_bounds = array<i64: 1, 256>}]} {
    %c0 = arith.constant 0 : index
    %c0_0 = arith.constant 0 : index
    %0 = vector.load %arg1[%c0, %c0_0] : memref<64x256xbf16, #tpu.memory_space<vmem>>, vector<64x256xbf16>
    %c0_1 = arith.constant 0 : index
    %c0_2 = arith.constant 0 : index
    %1 = vector.load %arg2[%c0_1, %c0_2] : memref<40x64xbf16, #tpu.memory_space<vmem>>, vector<40x64xbf16>
    %cst = arith.constant dense<0.000000e+00> : vector<40x256xf32>
    %2 = tpu.matmul %1, %0, %cst {dimension_numbers = #tpu.dot_dimension_numbers<[1], [0], [0], [1], [0, 0, 1, 1], [], []>} : vector<40x64xbf16>, vector<64x256xbf16>, vector<40x256xf32> -> vector<40x256xf32>
    %c0_3 = arith.constant 0 : index
    %c0_4 = arith.constant 0 : index
    %3 = vector.load %arg3[%c0_3, %c0_4] : memref<40x1xf32, #tpu.memory_space<vmem>>, vector<40x1xf32>
    %4 = vector.broadcast %3 : vector<40x1xf32> to vector<40x256xf32>
    %5 = arith.addf %2, %4 : vector<40x256xf32>
    %6 = vector.extract_strided_slice %5 {offsets = [32, 0], sizes = [1, 256], strides = [1, 1]} : vector<40x256xf32> to vector<1x256xf32>
    %7 = vector.extract_strided_slice %5 {offsets = [33, 0], sizes = [1, 256], strides = [1, 1]} : vector<40x256xf32> to vector<1x256xf32>
    %8 = vector.extract_strided_slice %5 {offsets = [34, 0], sizes = [1, 256], strides = [1, 1]} : vector<40x256xf32> to vector<1x256xf32>
    %9 = vector.extract_strided_slice %5 {offsets = [0, 0], sizes = [32, 256], strides = [1, 1]} : vector<40x256xf32> to vector<32x256xf32>
    %cst_5 = arith.constant 0.000000e+00 : f32
    %10 = vector.broadcast %cst_5 : f32 to vector<32x256xf32>
    %11 = arith.maximumf %9, %10 : vector<32x256xf32>
    %12 = arith.truncf %11 : vector<32x256xf32> to vector<32x256xbf16>
    %c0_6 = arith.constant 0 : index
    %c0_7 = arith.constant 0 : index
    %13 = vector.load %arg4[%c0_6, %c0_7] : memref<16x32xbf16, #tpu.memory_space<vmem>>, vector<16x32xbf16>
    %cst_8 = arith.constant dense<0.000000e+00> : vector<16x256xf32>
    %14 = tpu.matmul %13, %12, %cst_8 {dimension_numbers = #tpu.dot_dimension_numbers<[1], [0], [0], [1], [0, 0, 1, 1], [], []>} : vector<16x32xbf16>, vector<32x256xbf16>, vector<16x256xf32> -> vector<16x256xf32>
    %c0_9 = arith.constant 0 : index
    %c0_10 = arith.constant 0 : index
    %15 = vector.load %arg5[%c0_9, %c0_10] : memref<16x1xf32, #tpu.memory_space<vmem>>, vector<16x1xf32>
    %16 = vector.broadcast %15 : vector<16x1xf32> to vector<16x256xf32>
    %17 = arith.addf %14, %16 : vector<16x256xf32>
    %cst_11 = arith.constant 0.000000e+00 : f32
    %18 = vector.broadcast %cst_11 : f32 to vector<16x256xf32>
    %19 = arith.maximumf %17, %18 : vector<16x256xf32>
    %c0_12 = arith.constant 0 : index
    %c0_13 = arith.constant 0 : index
    %20 = vector.load %arg6[%c0_12, %c0_13] : memref<1x16xf32, #tpu.memory_space<vmem>>, vector<1x16xf32>
    %cst_14 = arith.constant dense<0.000000e+00> : vector<1x256xf32>
    %21 = tpu.matmul %20, %19, %cst_14 {dimension_numbers = #tpu.dot_dimension_numbers<[1], [0], [0], [1], [0, 0, 1, 1], [], []>} : vector<1x16xf32>, vector<16x256xf32>, vector<1x256xf32> -> vector<1x256xf32>
    %cst_15 = arith.constant 1.000000e+00 : f32
    %22 = vector.broadcast %cst_15 : f32 to vector<1x256xf32>
    %23 = arith.addf %6, %22 : vector<1x256xf32>
    %24 = arith.mulf %23, %7 : vector<1x256xf32>
    %c0_16 = arith.constant 0 : index
    %25 = memref.load %arg7[%c0_16] : memref<2xf32, #tpu.memory_space<smem>>
    %26 = vector.broadcast %25 : f32 to vector<1x256xf32>
    %27 = arith.addf %24, %26 : vector<1x256xf32>
    %28 = arith.addf %6, %27 : vector<1x256xf32>
    %cst_17 = arith.constant 1.000000e+00 : f32
    %29 = vector.broadcast %cst_17 : f32 to vector<1x256xf32>
    %30 = arith.addf %28, %29 : vector<1x256xf32>
    %31 = arith.mulf %30, %8 : vector<1x256xf32>
    %32 = arith.addf %31, %21 : vector<1x256xf32>
    %c1 = arith.constant 1 : index
    %33 = memref.load %arg7[%c1] : memref<2xf32, #tpu.memory_space<smem>>
    %34 = vector.broadcast %33 : f32 to vector<1x256xf32>
    %35 = arith.addf %32, %34 : vector<1x256xf32>
    %36 = arith.negf %35 : vector<1x256xf32>
    %37 = math.exp %36 : vector<1x256xf32>
    %cst_18 = arith.constant 1.000000e+00 : f32
    %38 = vector.broadcast %cst_18 : f32 to vector<1x256xf32>
    %39 = arith.addf %38, %37 : vector<1x256xf32>
    %40 = arith.divf %38, %39 : vector<1x256xf32>
    %c0_19 = arith.constant 0 : index
    %c0_20 = arith.constant 0 : index
    %41 = vector.load %arg8[%c0_19, %c0_20] : memref<1x256xf32, #tpu.memory_space<vmem>>, vector<1x256xf32>
    tpu.vector_store %arg8[%c0_19, %c0_20], %40 {strides = array<i32>} : memref<1x256xf32, #tpu.memory_space<vmem>>, vector<1x256xf32>,
    return
  }
  func.func @transform_0(%arg0: i32) -> (i32, i32) {
    %c0_i32 = arith.constant 0 : i32
    %c0_i32_0 = arith.constant 0 : i32
    return %c0_i32, %arg0 : i32, i32
  }
  func.func @transform_1(%arg0: i32) -> (i32, i32) {
    %c0_i32 = arith.constant 0 : i32
    %c0_i32_0 = arith.constant 0 : i32
    %c0_i32_1 = arith.constant 0 : i32
    return %c0_i32, %c0_i32_0 : i32, i32
  }
  func.func @transform_2(%arg0: i32) -> (i32, i32) {
    %c0_i32 = arith.constant 0 : i32
    %c0_i32_0 = arith.constant 0 : i32
    %c0_i32_1 = arith.constant 0 : i32
    return %c0_i32, %c0_i32_0 : i32, i32
  }
  func.func @transform_3(%arg0: i32) -> (i32, i32) {
    %c0_i32 = arith.constant 0 : i32
    %c0_i32_0 = arith.constant 0 : i32
    %c0_i32_1 = arith.constant 0 : i32
    return %c0_i32, %c0_i32_0 : i32, i32
  }
  func.func @transform_4(%arg0: i32) -> (i32, i32) {
    %c0_i32 = arith.constant 0 : i32
    %c0_i32_0 = arith.constant 0 : i32
    %c0_i32_1 = arith.constant 0 : i32
    return %c0_i32, %c0_i32_0 : i32, i32
  }
  func.func @transform_5(%arg0: i32) -> (i32, i32) {
    %c0_i32 = arith.constant 0 : i32
    %c0_i32_0 = arith.constant 0 : i32
    %c0_i32_1 = arith.constant 0 : i32
    return %c0_i32, %c0_i32_0 : i32, i32
  }
  func.func @transform_6(%arg0: i32) -> i32 {
    %c0_i32 = arith.constant 0 : i32
    %c0_i32_0 = arith.constant 0 : i32
    return %c0_i32 : i32
  }
  func.func @transform_7(%arg0: i32) -> (i32, i32) {
    %c0_i32 = arith.constant 0 : i32
    %c0_i32_0 = arith.constant 0 : i32
    return %c0_i32, %arg0 : i32, i32
  }
}

</mosaic_0001>

<bundles_post_ra>
// kernel: tpu_custom_call.1
= control target key start
LH: loop header
LB: loop body
LE: loop exit
PB: predicated region body
PF: predicated region fallthrough
CT: control target
= control target key end

     0   :  { %s1294_s0 = inlined_call_operand.hbm [shape: bf16[64,512], index: 0, kind: input, shape index: {}]   ;;  %s1295_s1 = inlined_call_operand.vmem [shape: bf16[40,64], index: 1, kind: input, shape index: {}]   ;;  %s1296_s2 = inlined_call_operand.vmem [shape: f32[40,1], index: 2, kind: input, shape index: {}]   ;;  %s1297_s3 = inlined_call_operand.vmem [shape: bf16[16,32], index: 3, kind: input, shape index: {}]   ;;  %s1298_s4 = inlined_call_operand.vmem [shape: f32[16,1], index: 4, kind: input, shape index: {}]   ;;  %s1299_s5 = inlined_call_operand.vmem [shape: f32[1,16], index: 5, kind: input, shape index: {}]   ;;  %s1300_s6 = inlined_call_operand.vmem [shape: f32[2], index: 6, kind: input, shape index: {}]   ;;  %s1301_s7 = inlined_call_operand.hbm [shape: f32[1,512], index: 7, kind: output, shape index: {}]  }
   0x1   :  { %1306 = sst [smem:[#allocation12_spill]] %s1300_s6 }
   0x2   :  { %12 = vsyncpa [#allocation3], 0 }
   0x3   :  { %14 = vsyncpa [#allocation3 + $0x1], 0 }
   0x4   :  { %15 = vsyncpa [#allocation5], 0 }
   0x5   :  { %16 = vsyncpa [#allocation4], 0 }
   0x6   :  { %18 = vsyncpa [#allocation4 + $0x1], 0  ;;  %s1090_s24 = smov 0   ;;  %s1092_s25 = smov 0  }
   0x7   :  { %s1094_s26 = smov 0   ;;  %s1096_s27 = smov 0  }
   0x8 LB: > { %s1111_s28 = sadd.s32 4294967295, %s1039_s27   ;;  %s801_s29 = sadd.s32 4294967294, %s1039_s27   ;;  %s1039_s27 = sphi %s1096_s27, %s1327_s27   ;;  %s1035_s26 = sphi %s1094_s26, %s1326_s26   ;;  %s1031_s25 = sphi %s1092_s25, %s1325_s25   ;;  %s1027_s24 = sphi %s1090_s24, %s1324_s24  }
   0x9   : > { %s1115_s30 = sadd.s32 1, %s1039_s27   ;;  %s31_s8 = sadd.s32 1, %s1035_s26 }
   0xa   : > { %s28_s9 = ssub.s32 %s1039_s27, %s1115_s30  ;;  %p38_p0 = scmp.ne.s32.totalorder %s1035_s26, %s1031_s25 }
   0xb   : > { %p29_p1 = scmp.eq.s32.totalorder %s28_s9, 0  ;;  %p39_p2 = scmp.eq.s32.totalorder %s1039_s27, 0 }
   0xc   : > { %p44_p3 = scmp.ne.s32.totalorder %s1031_s25, %s1027_s24  ;;  %p1303_p4 = scmp.eq.s32.totalorder %s1111_s28, 0 }
   0xd   : > { %s1127_s10 = scalar_select %p29_p1, %s1035_s26, %s31_s8  }
   0xe   : > { %p1129_p5 = por %p39_p2, %p38_p0  ;;  %p1135_p6 = por %p1303_p4, %p44_p3 }
   0xf   : > { %1307 = sst [smem:[#allocation11_spill]] %s1127_s10  ;;  %p194_p7 = scmp.eq.s32.totalorder %s1111_s28, 1 }
  0x10   : > { %s1309_s12 = scalar_select %p1135_p6, 1, 0 }
  0x11   : > { %p200_p8 = scmp.eq.s32.totalorder %s801_s29, 1  ;;  %p802_p9 = scmp.ge.s32.totalorder %s1039_s27, 1 }
  0x12   : > { %p207_p10 = scmp.lt.s32.totalorder %s1039_s27, 3  ;;  %p1142_p11 = por %p194_p7, %p38_p0 }
  0x13   : > { %p1146_p12 = por %p200_p8, %p44_p3  ;;  %s1313_s6 = sld [smem:[#allocation12_spill]] }
  0x14   : > { %s1310_s13 = scalar_select %p1142_p11, 1, 0 }
  0x15   : > { %s1311_s14 = scalar_select %p1146_p12, 1, 0 }
  0x16   : > { %p1150_p13 = pnand %p802_p9, %p207_p10  ;;  %p860_p2 = scmp.lt.s32.totalorder %s1039_s27, 2 }
  0x17   : > { %s246_s20 = sand.u32 1, %s1035_s26  }
  0x18   : > { %s1312_s15 = scalar_select %p1150_p13, 1, 0 }
  0x19   : > { %s235_s18 = sshll.u32 %s1313_s6, 4  ;;  %p847_p1 = pneg %p1150_p13  ;;  %s236_s18 = int_to_ptr.vmem [resolvable:$true] %s235_s18 }
  0x1a   : > { %p1170_p3 = pnand %p860_p2, %p1129_p5  ;;  %s805_s22 = sshll.u32 %s246_s20, 6 }
  0x1b   : > { %p1163_p7 = pnand %p847_p1, %p1303_p4  ;;  %s928_s23 = scalar_lea.vmem %s236_s18, 16 }
  0x1c   : > { %p929_p8 = scmp.ne.s32.totalorder %s236_s18, %s928_s23  ;;  %p936_p12 = scmp.lt.s32.totalorder %s236_s18, %s236_s18 }
  0x1d   : > { %p930_p9 = pneg %p1163_p7  ;;  %p937_p11 = scmp.lt.s32.totalorder %s928_s23, %s928_s23 }
  0x1f   : > { %p931_p10 = pnand %p930_p9, %p929_p8  ;;  %p938_p1 = por %p937_p11, %p936_p12 }
  0x21   : > { %p932_p0 = pneg %p931_p10 }
  0x23   : > { %p939_p4 = pnand %p938_p1, %p932_p0 }
  0x25   : > { %942 = shalt.err (!%p939_p4)
}
  0x26   : > { %s1041_s29 = smov [#allocation6]   ;;  %s837_s8 = sshll.u32 %s1039_s27, 7 }
  0x27   : > { %850 = dma.vmem_to_smem (!%p1163_p7), %s236_s18, 16, %s1041_s29, [#allocation5]  }
  0x28   : > { %s250_s9 = scalar_lea.vmem [#allocation2], %s805_s22  ;;  %s1182_s6 = scalar_lea.hbm %s1294_s0, %s837_s8 }
  0x29   : > { %s257_s11 = sshll.u32 %s250_s9, 4  ;;  %s1186_s23 = scalar_lea.sflag [#allocation3], %s246_s20  ;;  %s1184_s11 = int_to_ptr.vmem [resolvable:$true] %s257_s11 }
  0x2a   : > { %s943_s10 = scalar_lea.hbm %s1182_s6, 1024  ;;  %p945_p5 = pneg %p1170_p3 }
  0x2b   : > { %p944_p4 = scmp.ne.s32.totalorder %s1182_s6, %s943_s10  ;;  %s948_s22 = scalar_lea.hbm %s1294_s0, 2048 }
  0x2c   : > { %p949_p0 = scmp.lt.s32.totalorder %s1182_s6, %s1294_s0  ;;  %p950_p2 = scmp.lt.s32.totalorder %s948_s22, %s943_s10 }
  0x2d   : > { %p946_p11 = pnand %p945_p5, %p944_p4 }
  0x2e   : > { %p951_p7 = por %p950_p2, %p949_p0 }
  0x2f   : > { %p947_p12 = pneg %p946_p11 }
  0x31   : > { %p952_p8 = pnand %p951_p7, %p947_p12 }
  0x33   : > { %955 = shalt.err (!%p952_p8)
}
  0x34   : > { %s956_s20 = scalar_lea.vmem %s1184_s11, 1024  ;;  %s1042_s9 = smov [#allocation2]  }
  0x35   : > { %p957_p9 = scmp.ne.s32.totalorder %s1184_s11, %s956_s20  ;;  %s961_s16 = sshll.u32 %s1042_s9, 4  ;;  %s962_s16 = int_to_ptr.vmem [resolvable:$false] %s961_s16 }
  0x36   : > { %s963_s17 = scalar_lea.vmem %s962_s16, 2048  ;;  %p964_p4 = scmp.lt.s32.totalorder %s1184_s11, %s962_s16 }
  0x37   : > { %p959_p10 = pnand %p957_p9, %p945_p5  ;;  %p965_p11 = scmp.lt.s32.totalorder %s963_s17, %s956_s20 }
  0x39   : > { %p960_p1 = pneg %p959_p10  ;;  %p966_p6 = por %p965_p11, %p964_p4 }
  0x3b   : > { %p967_p13 = pnand %p966_p6, %p960_p1 }
  0x3d   : > { %970 = shalt.err (!%p967_p13)
}
  0x3e   : > { %s1043_s10 = smov 256   ;;  %s1044_s18 = smov 128  }
  0x3f   : > { %s1045_s19 = smov 8   ;;  %p1316_p5 = scmp.ne.s32.totalorder %s1312_s15, 0 }
  0x40   : > { %854 = dma.hbm_to_vmem [thread:$0]  (!%p1170_p3), %s1182_s6, 1024, %s1184_s11, %s1186_s23, %s1043_s10, %s1044_s18, %s1045_s19  }
  0x41   : > { %269 = sbr.rel (%p1316_p5) target bundleno = 773 (0x305), region = 48  ;;  %s1210_s22 = sand.u32 (!%p1316_p5), 1, %s1031_s25  }
  0x42   : > { %s809_s29 = sshll.u32 (!%p1316_p5), %s1210_s22, 6  ;;  %s272_s8 = scalar_lea.sflag (!%p1316_p5), [#allocation3], %s1210_s22 }
  0x43   : > { %s275_s20 = scalar_lea.vmem (!%p1316_p5), [#allocation2], %s809_s29  ;;  %p1317_p6 = scmp.ne.s32.totalorder (!%p1316_p5), %s1309_s12, 0 }
  0x46   : > { %1014 = dma.done.wait (%p1317_p6), %s272_s8, 1024  }
  0x47   : > { %1016 = vsyncadd (%p1317_p6), %s272_s8, 4294966272  ;;  %p1318_p13 = scmp.eq.s32.totalorder %s1111_s28, 0 }
  0x49   : > { %1018 = dma.done.wait (%p1318_p13), [#allocation5], 16   ;;  %p1319_p3 = pmov %p1318_p13 }
  0x4b   : > { %1020 = vsyncadd (%p1319_p3), [#allocation5], 4294967280 }
  0x4c   : > { %284 = sfence }
  0x4d   : > { %v904_v0 = vld [vmem:[%s275_s20 + $0x34] ss:$8 sps:$4 sm:$0xff]   ;;  %v906_v1 = vld [vmem:[%s275_s20 + $0x30] ss:$8 sps:$4 sm:$0xff]   ;;  %v1046_v2 = vmov 0   ;;  %v327_v9 = vld [vmem:[%s1296_s2] sm:$0xff] }
  0x4e   : > { %452 = vmatprep.mubr.bf16.mxu0 %v1046_v2  ;;  %902 = vset.pattern.permute.xlu0 %v1046_v2  ;;  %v907_v3 = vld [vmem:[%s275_s20 + $0x24] ss:$8 sps:$4 sm:$0xff]   ;;  %v909_v4 = vld [vmem:[%s275_s20 + $0x20] ss:$8 sps:$4 sm:$0xff]   ;;  %v910_v5 = vld [vmem:[%s275_s20 + $0x14] ss:$8 sps:$4 sm:$0xff]  }
  0x4f   : > { %428 = vmatprep.subr.bf16.mxu0 %v904_v0  ;;  %903 = vset.pattern.permute.xlu1 %v1046_v2  ;;  %v912_v6 = vld [vmem:[%s275_s20 + $0x10] ss:$8 sps:$4 sm:$0xff]   ;;  %v913_v7 = vld [vmem:[%s275_s20 + $0x4] ss:$8 sps:$4 sm:$0xff]   ;;  %v915_v12 = vld [vmem:[%s275_s20] ss:$8 sps:$4 sm:$0xff]  }
  0x50   : > { %429 = vmatpush1.bf16.msra.mxu0 %v906_v1  ;;  %548 = vmatprep.mubr.bf16.mxu1 %v1046_v2  ;;  %v329_v8 = vld [vmem:[%s1296_s2 + $0x10] sm:$0xff]  ;;  %v330_v10 = vld [vmem:[%s1296_s2 + $0x18] sm:$0xff]  ;;  %v328_v11 = vld [vmem:[%s1296_s2 + $0x8] sm:$0xff]  ;;  %vm410_vm0 = vcmask 523264   ;;  %vm512_vm1 = vcmask 261120   ;;  %v1047_v56 = vmov 0.0  }
  0x51   : > { %430 = vmatprep.subr.bf16.mxu0 %v907_v3  ;;  %344 = vperm.xlu0 %902, %v329_v8   ;;  %v916_v13 = vld [vmem:[%s1295_s1] sm:$0xff]   ;;  %v496_v14 = vld [vmem:[%s1298_s4 + $0x8] sm:$0xff]  ;;  %v918_v18 = vld [vmem:[%s1295_s1 + $0x10] ss:$0 sps:$4 sm:$0xff]   ;;  %vm564_vm2 = vcmask 130048   ;;  %s649_s10 = sld [smem:[#allocation6]] }
  0x52   : > { %334 = vperm.xlu1 %903, %v327_v9   ;;  %v495_v15 = vld [vmem:[%s1298_s4] sm:$0xff]  ;;  %v917_v17 = vld [vmem:[%s1295_s1 + $0x8] sm:$0xff]   ;;  %s829_s18 = sld [smem:[#allocation6 + $0x1]]  ;;  %s811_s19 = sshll.u32 %s1210_s22, 1 }
  0x53   : > { %v331_v16 = vld [vmem:[%s1296_s2 + $0x20] sm:$0xff]  ;;  %s838_s29 = sshll.u32 %s1111_s28, 5  ;;  %s310_s8 = scalar_lea.vmem [#allocation7], %s811_s19 }
  0x54   : > { %431 = vmatpush1.bf16.msra.mxu0 %v909_v4  ;;  %v919_v55 = vld [vmem:[%s1297_s3] sm:$0xff]   ;;  %s719_s20 = sshll.u32 %s310_s8, 4  ;;  %s717_s15 = scalar_lea.hbm %s1301_s7, %s838_s29  ;;  %s720_s20 = int_to_ptr.vmem [resolvable:$true] %s719_s20 }
  0x55   : > { %432 = vmatprep.subr.bf16.mxu0 %v910_v5  ;;  %349 = vperm.xlu0 %902, %v330_v10   ;;  %s705_s21 = scalar_lea.sflag [#allocation4], %s1210_s22  ;;  %s971_s11 = scalar_lea.vmem %s720_s20, 32 }
  0x56   : > { %339 = vperm.xlu1 %903, %v328_v11   ;;  %p972_p12 = scmp.ne.s32.totalorder %s720_s20, %s971_s11  ;;  %p1320_p0 = scmp.ne.s32.totalorder %s1310_s13, 0 }
  0x57   : > { %s1049_s23 = smov [#allocation7]  }
  0x58   : > { %433 = vmatpush1.bf16.msra.mxu0 %v912_v6  ;;  %p973_p2 = pnand %p972_p12, %p1320_p0  ;;  %s975_s9 = sshll.u32 %s1049_s23, 4  ;;  %s976_s9 = int_to_ptr.vmem [resolvable:$false] %s975_s9 }
  0x59   : > { %434 = vmatprep.subr.bf16.mxu0 %v913_v7  ;;  %504 = vperm.xlu0 %902, %v496_v14   ;;  %v563_v7 = vld [vmem:[%s1299_s5] sm:$0x1]  ;;  %s977_s28 = scalar_lea.vmem %s976_s9, 64  ;;  %p978_p8 = scmp.lt.s32.totalorder %s720_s20, %s976_s9 }
  0x5a   : > { %499 = vperm.xlu1 %903, %v495_v15   ;;  %p974_p7 = pneg %p973_p2  ;;  %p979_p9 = scmp.lt.s32.totalorder %s977_s28, %s971_s11 }
  0x5c   : > { %435 = vmatpush1.bf16.msra.mxu0 %v915_v12  ;;  %p980_p10 = por %p979_p9, %p978_p8 }
  0x5d   : > { %354 = vperm.xlu0 %902, %v331_v16   ;;  %v650_v16 = vstv %s649_s10 }
  0x5e   : > { %p981_p1 = pnand %p980_p10, %p974_p7 }
  0x5f   : > { %823 = vmatmul.mubr.msk.bf16.vlgmr.msra.gmra.mxu0 %vm410_vm0, %v916_v13 }
  0x60   : > { %462 = vmatprep.mubr.bf16.mxu0 %v1046_v2 }
  0x67   : > { %824 = vmatmul.mubr.msk.bf16.gmra.mxu0 %vm410_vm0, %v917_v17 }
  0x68   : > { %472 = vmatprep.mubr.bf16.mxu0 %v1046_v2 }
  0x6f   : > { %825 = vmatmul.mubr.msk.bf16.gmra.mxu0 %vm410_vm0, %v918_v18 }
  0xcc   : > { %v345_v22 = vpop.permute.xlu0 %344 }
  0xcd   : > { %v335_v23 = vpop.permute.xlu1 %334 }
  0xd0   : > { %v350_v27 = vpop.permute.xlu0 %349 }
  0xd1   : > { %v340_v28 = vpop.permute.xlu1 %339 }
  0xd4   : > { %v505_v60 = vpop.permute.xlu0 %504 }
  0xd5   : > { %v500_v61 = vpop.permute.xlu1 %499 }
  0xd8   : > { %v355_v8 = vpop.permute.xlu0 %354 }
 0x11f   : > { %v454_v19 = vpop.f32.mrf.mxu0 }
 0x120   : > { %v455_v43 = vadd.f32 %v454_v19, %v335_v23 }
 0x121   : > { %v456_v20 = vpop.f32.mrf.mxu0 }
 0x122   : > { %v457_v35 = vadd.f32 %v456_v20, %v335_v23  ;;  %v481_v52 = vmax.f32 %v455_v43, 0.0  ;;  %v687_v43 = vlaneseq }
 0x123   : > { %v458_v21 = vpop.f32.mrf.mxu0 }
 0x124   : > { %v459_v37 = vadd.f32 %v458_v21, %v340_v28  ;;  %v482_v46 = vmax.f32 %v457_v35, 0.0  ;;  %vm701_vm3 = vcmp.lt.s32.totalorder %v687_v43, 256 }
 0x125   : > { %v460_v24 = vpop.f32.mrf.mxu0 }
 0x126   : > { %v461_v30 = vadd.f32 %v460_v24, %v340_v28  ;;  %v483_v48 = vmax.f32 %v459_v37, 0.0  ;;  %v666_v28 = vstv %s829_s18 }
 0x127   : > { %v464_v25 = vpop.f32.mrf.mxu0 }
 0x128   : > { %v465_v33 = vadd.f32 %v464_v25, %v345_v22  ;;  %v484_v40 = vmax.f32 %v461_v30, 0.0  ;;  %v489_v54 = vpack.c.bf16 %v483_v48, %v481_v52 }
 0x129   : > { %v466_v26 = vpop.f32.mrf.mxu0 }
 0x12a   : > { %v467_v31 = vadd.f32 %v466_v26, %v345_v22  ;;  %v485_v44 = vmax.f32 %v465_v33, 0.0  ;;  %v490_v51 = vpack.c.bf16 %v484_v40, %v482_v46 }
 0x12b   : > { %v468_v29 = vpop.f32.mrf.mxu0 }
 0x12c   : > { %v469_v32 = vadd.f32 %v468_v29, %v350_v27  ;;  %v486_v41 = vmax.f32 %v467_v31, 0.0 }
 0x12d   : > { %v470_v34 = vpop.f32.mrf.mxu0 }
 0x12e   : > { %v471_v36 = vadd.f32 %v470_v34, %v350_v27  ;;  %v487_v38 = vmax.f32 %v469_v32, 0.0 }
 0x12f   : > { %v474_v39 = vpop.f32.mrf.mxu0 }
 0x130   : > { %v488_v42 = vmax.f32 %v471_v36, 0.0  ;;  %v491_v49 = vpack.c.bf16 %v487_v38, %v485_v44  ;;  %v475_v9 = vadd.f32 %v474_v39, %v355_v8 }
 0x131   : > { %v476_v45 = vpop.f32.mrf.mxu0 }
 0x132   : > { %v492_v47 = vpack.c.bf16 %v488_v42, %v486_v41  ;;  %v477_v10 = vadd.f32 %v476_v45, %v355_v8  ;;  %v639_v11 = vadd.f32 1.0, %v475_v9  ;;  %v643_v12 = vrot.slane %v475_v9, 1 }
 0x133   : > { %v478_v50 = vpop.f32.mrf.mxu0  ;;  %v657_v23 = vrot.slane %v475_v9, 2  ;;  %v1048_v41 = vmov 1966171168   ;;  %v688_v45 = vshrl.u32 %v687_v43, 7 }
 0x134   : > { %528 = vmatprep.subr.bf16.mxu1 %v492_v47  ;;  %v640_v13 = vadd.f32 1.0, %v477_v10  ;;  %v644_v14 = vrot.slane %v477_v10, 1  ;;  %v647_v15 = vmul.f32 %v643_v12, %v639_v11  ;;  %v658_v26 = vrot.slane %v477_v10, 2 }
 0x135   : > { %529 = vmatpush1.bf16.msra.mxu1 %v491_v49  ;;  %v479_v53 = vpop.f32.mrf.mxu0  ;;  %v685_v42 = vunpack.c.l.s4 %v1048_v41 }
 0x136   : > { %530 = vmatprep.subr.bf16.mxu1 %v490_v51  ;;  %v648_v17 = vmul.f32 %v644_v14, %v640_v13  ;;  %v651_v18 = vadd.f32 %v650_v16, %v647_v15 }
 0x137   : > { %v686_v44 = vunpack.c.0.s8 %v685_v42 }
 0x138   : > { %v652_v19 = vadd.f32 %v650_v16, %v648_v17  ;;  %v653_v20 = vadd.f32 %v651_v18, %v475_v9 }
 0x139   : > { %531 = vmatpush1.bf16.msra.mxu1 %v489_v54  ;;  %v689_v47 = vsub.s32 %v686_v44, %v688_v45 }
 0x13a   : > { %v654_v21 = vadd.f32 %v652_v19, %v477_v10  ;;  %v655_v22 = vadd.f32 1.0, %v653_v20 }
 0x13c   : > { %827 = vmatmul.mubr.msk.bf16.vlgmr.msra.gmra.mxu1 %vm512_vm1, %v919_v55  ;;  %v656_v24 = vadd.f32 1.0, %v654_v21  ;;  %v661_v25 = vmul.f32 %v657_v23, %v655_v22 }
 0x13d   : > { %632 = vmatprep.mubr.f32.mxu1 %v1047_v56 }
 0x13e   : > { %v662_v30 = vmul.f32 %v658_v26, %v656_v24 }
 0x1fc   : > { %v550_v57 = vpop.f32.mrf.mxu1 }
 0x1fd   : > { %v551_v2 = vadd.f32 %v550_v57, %v500_v61 }
 0x1fe   : > { %v552_v58 = vpop.f32.mrf.mxu1 }
 0x1ff   : > { %v553_v0 = vadd.f32 %v552_v58, %v500_v61  ;;  %v559_v6 = vmax.f32 %v551_v2, 0.0 }
 0x200   : > { %v554_v59 = vpop.f32.mrf.mxu1 }
 0x201   : > { %v555_v62 = vadd.f32 %v554_v59, %v505_v60  ;;  %v560_v5 = vmax.f32 %v553_v0, 0.0 }
 0x202   : > { %v556_v63 = vpop.f32.mrf.mxu1 }
 0x203   : > { %v557_v1 = vadd.f32 %v556_v63, %v505_v60  ;;  %v561_v4 = vmax.f32 %v555_v62, 0.0 }
 0x205   : > { %v562_v3 = vmax.f32 %v557_v1, 0.0 }
 0x207   : > { %596 = vmatprep.subr.mxu1 %v562_v3 }
 0x208   : > { %597 = vmatpush1.msra.mxu1 %v561_v4 }
 0x209   : > { %598 = vmatprep.subr.mxu1 %v560_v5 }
 0x20a   : > { %599 = vmatpush1.msra.mxu1 %v559_v6 }
 0x20b   : > { %828 = vmatmul.mubr.msk.f32.vlgmr.msra.gmra.mxu1 %vm564_vm2, %v563_v7 }
 0x2cb   : > { %v634_v27 = vpop.f32.mrf.mxu1 }
 0x2cc   : > { %v663_v29 = vadd.f32 %v661_v25, %v634_v27 }
 0x2cd   : > { %v636_v31 = vpop.f32.mrf.mxu1 }
 0x2ce   : > { %v667_v32 = vadd.f32 %v666_v28, %v663_v29  ;;  %v664_v33 = vadd.f32 %v662_v30, %v636_v31 }
 0x2d0   : > { %v830_v34 = vmul.f32 -1.442695, %v667_v32  ;;  %v668_v35 = vadd.f32 %v666_v28, %v664_v33 }
 0x2d2   : > { %920 = vpow2.f32 %v830_v34  ;;  %v831_v36 = vmul.f32 -1.442695, %v668_v35 }
 0x2d4   : > { %922 = vpow2.f32 %v831_v36 }
 0x2df   : > { %v921_v37 = vpop.eup %920 }
 0x2e0   : > { %v675_v38 = vadd.f32 1.0, %v921_v37 }
 0x2e1   : > { %v923_v39 = vpop.eup %922 }
 0x2e2   : > { %v676_v40 = vadd.f32 1.0, %v923_v39  ;;  %924 = vrcp.f32 %v675_v38 }
 0x2e4   : > { %926 = vrcp.f32 %v676_v40 }
 0x2ef   : > { %v925_v46 = vpop.eup %924 }
 0x2f1   : > { %v927_v48 = vpop.eup %926 }
 0x2f2   : > { %v683_v49 = vcombine.low %v925_v46, %v927_v48 }
 0x2f4   : > { %v690_v50 = vrot.slane %v683_v49, %v689_v47 }
 0x2f6   : > { %v697_v51 = vrot.slane %v690_v50, %v689_v47 }
 0x2f8   : > { %703 = vst.msk [vmem:[%s310_s8] sm:$0x3] %vm701_vm3, %v697_v51 }
 0x2f9   : > { %984 = shalt.err (!%p981_p1)
}
 0x2fa   : > { %s985_s16 = scalar_lea.hbm %s717_s15, 32  ;;  %s989_s10 = scalar_lea.hbm %s1301_s7, 64 }
 0x2fb   : > { %p986_p4 = scmp.ne.s32.totalorder %s717_s15, %s985_s16  ;;  %p990_p6 = scmp.lt.s32.totalorder %s717_s15, %s1301_s7 }
 0x2fc   : > { %p991_p13 = scmp.lt.s32.totalorder %s989_s10, %s985_s16 }
 0x2fd   : > { %p987_p11 = pnand %p986_p4, %p1320_p0 }
 0x2fe   : > { %p992_p3 = por %p991_p13, %p990_p6 }
 0x2ff   : > { %p988_p5 = pneg %p987_p11 }
 0x301   : > { %p993_p12 = pnand %p992_p3, %p988_p5 }
 0x303   : > { %996 = shalt.err (!%p993_p12)
}
 0x304   : > { %845 = dma.vmem_to_hbm [thread:$0]  (%p1320_p0), %s720_s20, 32, %s717_s15, %s705_s21  }
 0x305 PF: > { %s731_s29 = sand.u32 1, %s1027_s24   ;;  %p1321_p2 = scmp.ne.s32.totalorder %s1311_s14, 0 }
 0x306   : > { %p1322_p7 = scmp.ge.s32.totalorder %s1039_s27, 2  ;;  %s732_s8 = scalar_lea.sflag [#allocation4], %s731_s29 }
 0x308   : > { %p856_p8 = pnand %p1322_p7, %p1321_p2 }
 0x30a   : > { %p857_p9 = pneg %p856_p8 }
 0x30c   : > { %1022 = dma.done.wait (%p857_p9), %s732_s8, 32  }
 0x30d   : > { %1024 = vsyncadd (%p857_p9), %s732_s8, 4294967264  ;;  %s1323_s6 = sld [smem:[#allocation11_spill]]  ;;  %p21_p10 = scmp.ge.s32.totalorder %s1115_s30, 4  }
 0x30e   : > { %s1324_s24 = smov %s1031_s25  ;;  %s1325_s25 = smov %s1035_s26 }
 0x30f   : > { %s1327_s27 = smov %s1115_s30  ;;  %23 = sbr.rel (!%p21_p10) target bundleno = 8 (0x8), region = 98 }
 0x313   : > { %s1326_s26 = smov %s1323_s6 }
 0x314   :  { %737 = vsyncpa [#allocation3], 1 }
 0x315   :  { %739 = vsyncpa [#allocation3 + $0x1], 1 }
 0x316   :  { %740 = vsyncpa [#allocation4], 1 }
 0x317   :  { %742 = vsyncpa [#allocation4 + $0x1], 1 }
 0x318   :  { %743 = vsyncpa [#allocation5], 1 }
 0x319   :  { %745 = vsyncpa [#allocation5 + $0x1], 1 }

</bundles_post_ra>
